<compile_context>
chip_gen: v7x
topology: tpu7x:2x2x1
jax: 0.10.0
libtpu: 0.0.40
codegen_flags: <defaults>
</compile_context>

<pallas_src>
import jax
import jax.numpy as jnp
import numpy as np
from jax.experimental import pallas as pl
from jax.experimental.pallas import tpu as pltpu


def ddpg_critic_kernel(
    x_ref,                      # [tm, num_state + num_action]
    w_in_ref, b_in_ref,         # fused block-diag state_net + action_net
    w1_ref, b1_ref,             # linear1 (48 -> 256), possibly bf16
    w2_ref, b2_ref,             # linear2 (256 -> 256), possibly bf16
    w3_ref, b3_ref,             # linear3 as a (1, 256) row + (1, 1) bias
    out_ref,                    # [tm, 1]
):
    f32 = jnp.float32

    # Fused state/action embedding: relu([s, a] @ blockdiag(Ws, Wa) + [bs, ba])
    emb = jnp.maximum(
        jnp.dot(x_ref[...], w_in_ref[...], preferred_element_type=f32)
        + b_in_ref[...], 0.0)

    # linear1 + ReLU (activations cast to the weight dtype; f32 accumulate)
    h1 = jnp.maximum(
        jnp.dot(emb.astype(w1_ref.dtype), w1_ref[...],
                preferred_element_type=f32)
        + b1_ref[...], 0.0)

    # linear2 + ReLU
    h2 = jnp.maximum(
        jnp.dot(h1.astype(w2_ref.dtype), w2_ref[...],
                preferred_element_type=f32)
        + b2_ref[...], 0.0)

    # linear3 (N=1): VPU multiply + XLU lane-reduce instead of an MXU push.
    q = jnp.sum(h2 * w3_ref[...], axis=-1, keepdims=True) + b3_ref[...]
    out_ref[...] = q.astype(out_ref.dtype)


def ddpg_critic_forward(state, action, params, *, tm=None):
    """state: [B, num_state], action: [B, num_action] -> [B, 1] (float32)."""
    B = state.shape[0]
    x = jnp.concatenate(
        [state.astype(jnp.float32), action.astype(jnp.float32)], axis=-1)
    K = x.shape[1]

    w_in, b_in, w1, b1, w2, b2, w3_row, b3 = params

    # Tile policy: single grid step for small/medium batches, 256-row tiles
    # (fills v6e/v7x MXU in M, multiple of 128 for v5e) for large batches so
    # the grid can also split across v7x's 2 TensorCores ("parallel").
    if tm is None:
        tm = B if B <= 2048 else 256
    B_pad = ((B + tm - 1) // tm) * tm
    if B_pad != B:
        x = jnp.pad(x, ((0, B_pad - B), (0, 0)))
    grid = (B_pad // tm,)

    def full_spec(shape):
        return pl.BlockSpec(shape, lambda i: (0,) * len(shape))

    in_specs = [
        pl.BlockSpec((tm, K), lambda i: (i, 0)),          # x tile
        full_spec(w_in.shape), full_spec(b_in.shape),
        full_spec(w1.shape), full_spec(b1.shape),
        full_spec(w2.shape), full_spec(b2.shape),
        full_spec(w3_row.shape), full_spec(b3.shape),
    ]
    out_specs = pl.BlockSpec((tm, 1), lambda i: (i, 0))

    out = pl.pallas_call(
        ddpg_critic_kernel,
        out_shape=jax.ShapeDtypeStruct((B_pad, 1), jnp.float32),
        grid_spec=pltpu.PrefetchScalarGridSpec(
            num_scalar_prefetch=0,
            grid=grid,
            in_specs=in_specs,
            out_specs=out_specs,
        ),
        compiler_params=pltpu.CompilerParams(
            dimension_semantics=("parallel",)),
    )(x, w_in, b_in, w1, b1, w2, b2, w3_row, b3)

    return out[:B]


def init_params(key, num_state, num_action,
                n_hidden_action=16, n_hidden_state=32, n_hidden=256,
                hidden_dtype=jnp.float32):
    """PyTorch-style uniform(+/- 1/sqrt(fan_in)) init, stored pre-fused:

      w_in : (num_state+num_action, 48) block-diag of state_net / action_net
      b_in : (1, 48) = [bs, ba]
      w1   : (48, 256), w2 : (256, 256)  (optionally bf16)
      w3   : (1, 256) row (for the in-kernel lane reduce), b3 : (1, 1)
    """
    def linear(key, fan_in, fan_out):
        kw, kb = jax.random.split(key)
        bound = 1.0 / np.sqrt(fan_in)
        w = jax.random.uniform(kw, (fan_in, fan_out), jnp.float32, -bound, bound)
        b = jax.random.uniform(kb, (1, fan_out), jnp.float32, -bound, bound)
        return w, b

    k1, k2, k3, k4, k5 = jax.random.split(key, 5)
    ws, bs = linear(k1, num_state, n_hidden_state)
    wa, ba = linear(k2, num_action, n_hidden_action)
    w1, b1 = linear(k3, n_hidden_state + n_hidden_action, n_hidden)
    w2, b2 = linear(k4, n_hidden, n_hidden)
    w3, b3 = linear(k5, n_hidden, 1)

    n_emb = n_hidden_state + n_hidden_action
    w_in = jnp.zeros((num_state + num_action, n_emb), jnp.float32)
    w_in = w_in.at[:num_state, :n_hidden_state].set(ws)
    w_in = w_in.at[num_state:, n_hidden_state:].set(wa)
    b_in = jnp.concatenate([bs, ba], axis=-1)

    return (w_in, b_in,
            w1.astype(hidden_dtype), b1,
            w2.astype(hidden_dtype), b2,
            w3.T, b3)


def reference_forward(state, action, params, num_state, n_hidden_state):
    """Plain-JAX mirror of the original torch module (separate nets + cat)."""
    w_in, b_in, w1, b1, w2, b2, w3_row, b3 = params
    ws = w_in[:num_state, :n_hidden_state]
    wa = w_in[num_state:, n_hidden_state:]
    bs = b_in[:, :n_hidden_state]
    ba = b_in[:, n_hidden_state:]
    s_emb = jax.nn.relu(state @ ws + bs)
    a_emb = jax.nn.relu(action @ wa + ba)
    emb = jnp.concatenate([s_emb, a_emb], axis=-1)
    h1 = jax.nn.relu(emb @ w1.astype(jnp.float32) + b1)
    h2 = jax.nn.relu(h1 @ w2.astype(jnp.float32) + b2)
    return h2 @ w3_row.astype(jnp.float32).T + b3


if __name__ == "__main__":
    num_state, num_action = 8, 4
    n_hidden_state = 32
    batch = 64

    key = jax.random.PRNGKey(0)
    kp, ks, ka = jax.random.split(key, 3)

    state = jax.random.normal(ks, (batch, num_state), jnp.float32)
    action = jax.random.normal(ka, (batch, num_action), jnp.float32)

    # 1) f32 weights, whole batch in one grid step -> exact check.
    params = init_params(kp, num_state, num_action)
    out = jax.block_until_ready(ddpg_critic_forward(state, action, params))
    ref = reference_forward(state, action, params, num_state, n_hidden_state)
    np.testing.assert_allclose(np.asarray(out), np.asarray(ref),
                               rtol=1e-5, atol=1e-5)

    # 2) multi-step parallel grid path (tm override).
    out_tiled = jax.block_until_ready(
        ddpg_critic_forward(state, action, params, tm=32))
    np.testing.assert_allclose(np.asarray(out_tiled), np.asarray(ref),
                               rtol=1e-5, atol=1e-5)

    # 3) non-multiple batch -> exercises the zero-padding path.
    out_odd = jax.block_until_ready(
        ddpg_critic_forward(state[:37], action[:37], params, tm=32))
    np.testing.assert_allclose(np.asarray(out_odd), np.asarray(ref[:37]),
                               rtol=1e-5, atol=1e-5)

    # 4) bf16 hidden weights (MXU-native on v6e/v7x), f32 accumulate.
    params_bf16 = init_params(kp, num_state, num_action,
                              hidden_dtype=jnp.bfloat16)
    out_bf16 = jax.block_until_ready(
        ddpg_critic_forward(state, action, params_bf16))
    np.testing.assert_allclose(np.asarray(out_bf16), np.asarray(ref),
                               rtol=5e-2, atol=5e-2)

    print("KERNEL_OK")
</pallas_src>

<mosaic_0001>
module attributes {stable_mosaic.version = 11 : i64} {
  func.func @ddpg_critic_kernel(%arg0: i32, %arg1: memref<64x12xf32, #tpu.memory_space<vmem>>, %arg2: memref<12x48xf32, #tpu.memory_space<vmem>>, %arg3: memref<1x48xf32, #tpu.memory_space<vmem>>, %arg4: memref<48x256xf32, #tpu.memory_space<vmem>>, %arg5: memref<1x256xf32, #tpu.memory_space<vmem>>, %arg6: memref<256x256xf32, #tpu.memory_space<vmem>>, %arg7: memref<1x256xf32, #tpu.memory_space<vmem>>, %arg8: memref<1x256xf32, #tpu.memory_space<vmem>>, %arg9: memref<1x1xf32, #tpu.memory_space<vmem>>, %arg10: memref<64x1xf32, #tpu.memory_space<vmem>>) attributes {dimension_semantics = [#tpu.dimension_semantics<parallel>], iteration_bounds = array<i64: 1>, scalar_prefetch = 0 : i64, scratch_operands = 0 : i64, tpu.core_type = #tpu.core_type<tc>, window_params = [{transform_indices = @transform_0, window_bounds = array<i64: 64, 12>}, {pipeline_mode = #tpu.pipeline_mode<synchronous>, transform_indices = @transform_1, window_bounds = array<i64: 12, 48>}, {pipeline_mode = #tpu.pipeline_mode<synchronous>, transform_indices = @transform_2, window_bounds = array<i64: 1, 48>}, {pipeline_mode = #tpu.pipeline_mode<synchronous>, transform_indices = @transform_3, window_bounds = array<i64: 48, 256>}, {pipeline_mode = #tpu.pipeline_mode<synchronous>, transform_indices = @transform_4, window_bounds = array<i64: 1, 256>}, {pipeline_mode = #tpu.pipeline_mode<synchronous>, transform_indices = @transform_5, window_bounds = array<i64: 256, 256>}, {pipeline_mode = #tpu.pipeline_mode<synchronous>, transform_indices = @transform_6, window_bounds = array<i64: 1, 256>}, {pipeline_mode = #tpu.pipeline_mode<synchronous>, transform_indices = @transform_7, window_bounds = array<i64: 1, 256>}, {pipeline_mode = #tpu.pipeline_mode<synchronous>, transform_indices = @transform_8, window_bounds = array<i64: 1, 1>}, {transform_indices = @transform_9, window_bounds = array<i64: 64, 1>}]} {
    %c0 = arith.constant 0 : index
    %c0_0 = arith.constant 0 : index
    %0 = vector.load %arg1[%c0, %c0_0] : memref<64x12xf32, #tpu.memory_space<vmem>>, vector<64x12xf32>
    %c0_1 = arith.constant 0 : index
    %c0_2 = arith.constant 0 : index
    %1 = vector.load %arg2[%c0_1, %c0_2] : memref<12x48xf32, #tpu.memory_space<vmem>>, vector<12x48xf32>
    %cst = arith.constant dense<0.000000e+00> : vector<64x48xf32>
    %2 = tpu.matmul %0, %1, %cst {dimension_numbers = #tpu.dot_dimension_numbers<[1], [0], [0], [1], [0, 0, 1, 1], [], []>} : vector<64x12xf32>, vector<12x48xf32>, vector<64x48xf32> -> vector<64x48xf32>
    %c0_3 = arith.constant 0 : index
    %c0_4 = arith.constant 0 : index
    %3 = vector.load %arg3[%c0_3, %c0_4] : memref<1x48xf32, #tpu.memory_space<vmem>>, vector<1x48xf32>
    %4 = vector.broadcast %3 : vector<1x48xf32> to vector<64x48xf32>
    %5 = arith.addf %2, %4 : vector<64x48xf32>
    %cst_5 = arith.constant 0.000000e+00 : f32
    %6 = vector.broadcast %cst_5 : f32 to vector<64x48xf32>
    %7 = arith.maximumf %5, %6 : vector<64x48xf32>
    %c0_6 = arith.constant 0 : index
    %c0_7 = arith.constant 0 : index
    %8 = vector.load %arg4[%c0_6, %c0_7] : memref<48x256xf32, #tpu.memory_space<vmem>>, vector<48x256xf32>
    %cst_8 = arith.constant dense<0.000000e+00> : vector<64x256xf32>
    %9 = tpu.matmul %7, %8, %cst_8 {dimension_numbers = #tpu.dot_dimension_numbers<[1], [0], [0], [1], [0, 0, 1, 1], [], []>} : vector<64x48xf32>, vector<48x256xf32>, vector<64x256xf32> -> vector<64x256xf32>
    %c0_9 = arith.constant 0 : index
    %c0_10 = arith.constant 0 : index
    %10 = vector.load %arg5[%c0_9, %c0_10] : memref<1x256xf32, #tpu.memory_space<vmem>>, vector<1x256xf32>
    %11 = vector.broadcast %10 : vector<1x256xf32> to vector<64x256xf32>
    %12 = arith.addf %9, %11 : vector<64x256xf32>
    %cst_11 = arith.constant 0.000000e+00 : f32
    %13 = vector.broadcast %cst_11 : f32 to vector<64x256xf32>
    %14 = arith.maximumf %12, %13 : vector<64x256xf32>
    %c0_12 = arith.constant 0 : index
    %c0_13 = arith.constant 0 : index
    %15 = vector.load %arg6[%c0_12, %c0_13] : memref<256x256xf32, #tpu.memory_space<vmem>>, vector<256x256xf32>
    %cst_14 = arith.constant dense<0.000000e+00> : vector<64x256xf32>
    %16 = tpu.matmul %14, %15, %cst_14 {dimension_numbers = #tpu.dot_dimension_numbers<[1], [0], [0], [1], [0, 0, 1, 1], [], []>} : vector<64x256xf32>, vector<256x256xf32>, vector<64x256xf32> -> vector<64x256xf32>
    %c0_15 = arith.constant 0 : index
    %c0_16 = arith.constant 0 : index
    %17 = vector.load %arg7[%c0_15, %c0_16] : memref<1x256xf32, #tpu.memory_space<vmem>>, vector<1x256xf32>
    %18 = vector.broadcast %17 : vector<1x256xf32> to vector<64x256xf32>
    %19 = arith.addf %16, %18 : vector<64x256xf32>
    %cst_17 = arith.constant 0.000000e+00 : f32
    %20 = vector.broadcast %cst_17 : f32 to vector<64x256xf32>
    %21 = arith.maximumf %19, %20 : vector<64x256xf32>
    %c0_18 = arith.constant 0 : index
    %c0_19 = arith.constant 0 : index
    %22 = vector.load %arg8[%c0_18, %c0_19] : memref<1x256xf32, #tpu.memory_space<vmem>>, vector<1x256xf32>
    %23 = vector.broadcast %22 : vector<1x256xf32> to vector<64x256xf32>
    %24 = arith.mulf %21, %23 : vector<64x256xf32>
    %cst_20 = arith.constant dense<0.000000e+00> : vector<64xf32>
    %25 = vector.multi_reduction <add>, %24, %cst_20 [1] : vector<64x256xf32> to vector<64xf32>
    %26 = vector.shape_cast %25 : vector<64xf32> to vector<64x1xf32>
    %c0_21 = arith.constant 0 : index
    %c0_22 = arith.constant 0 : index
    %27 = vector.load %arg9[%c0_21, %c0_22] : memref<1x1xf32, #tpu.memory_space<vmem>>, vector<1x1xf32>
    %28 = vector.broadcast %27 : vector<1x1xf32> to vector<64x1xf32>
    %29 = arith.addf %26, %28 : vector<64x1xf32>
    %c0_23 = arith.constant 0 : index
    %c0_24 = arith.constant 0 : index
    %30 = vector.load %arg10[%c0_23, %c0_24] : memref<64x1xf32, #tpu.memory_space<vmem>>, vector<64x1xf32>
    tpu.vector_store %arg10[%c0_23, %c0_24], %29 {strides = array<i32>} : memref<64x1xf32, #tpu.memory_space<vmem>>, vector<64x1xf32>,
    return
  }
  func.func @transform_0(%arg0: i32) -> (i32, i32) {
    %c0_i32 = arith.constant 0 : i32
    %c0_i32_0 = arith.constant 0 : i32
    return %arg0, %c0_i32 : i32, i32
  }
  func.func @transform_1(%arg0: i32) -> (i32, i32) {
    %c0_i32 = arith.constant 0 : i32
    %c0_i32_0 = arith.constant 0 : i32
    %c0_i32_1 = arith.constant 0 : i32
    return %c0_i32, %c0_i32_0 : i32, i32
  }
  func.func @transform_2(%arg0: i32) -> (i32, i32) {
    %c0_i32 = arith.constant 0 : i32
    %c0_i32_0 = arith.constant 0 : i32
    %c0_i32_1 = arith.constant 0 : i32
    return %c0_i32, %c0_i32_0 : i32, i32
  }
  func.func @transform_3(%arg0: i32) -> (i32, i32) {
    %c0_i32 = arith.constant 0 : i32
    %c0_i32_0 = arith.constant 0 : i32
    %c0_i32_1 = arith.constant 0 : i32
    return %c0_i32, %c0_i32_0 : i32, i32
  }
  func.func @transform_4(%arg0: i32) -> (i32, i32) {
    %c0_i32 = arith.constant 0 : i32
    %c0_i32_0 = arith.constant 0 : i32
    %c0_i32_1 = arith.constant 0 : i32
    return %c0_i32, %c0_i32_0 : i32, i32
  }
  func.func @transform_5(%arg0: i32) -> (i32, i32) {
    %c0_i32 = arith.constant 0 : i32
    %c0_i32_0 = arith.constant 0 : i32
    %c0_i32_1 = arith.constant 0 : i32
    return %c0_i32, %c0_i32_0 : i32, i32
  }
  func.func @transform_6(%arg0: i32) -> (i32, i32) {
    %c0_i32 = arith.constant 0 : i32
    %c0_i32_0 = arith.constant 0 : i32
    %c0_i32_1 = arith.constant 0 : i32
    return %c0_i32, %c0_i32_0 : i32, i32
  }
  func.func @transform_7(%arg0: i32) -> (i32, i32) {
    %c0_i32 = arith.constant 0 : i32
    %c0_i32_0 = arith.constant 0 : i32
    %c0_i32_1 = arith.constant 0 : i32
    return %c0_i32, %c0_i32_0 : i32, i32
  }
  func.func @transform_8(%arg0: i32) -> (i32, i32) {
    %c0_i32 = arith.constant 0 : i32
    %c0_i32_0 = arith.constant 0 : i32
    %c0_i32_1 = arith.constant 0 : i32
    return %c0_i32, %c0_i32_0 : i32, i32
  }
  func.func @transform_9(%arg0: i32) -> (i32, i32) {
    %c0_i32 = arith.constant 0 : i32
    %c0_i32_0 = arith.constant 0 : i32
    return %arg0, %c0_i32 : i32, i32
  }
}

</mosaic_0001>

<bundles_post_ra>
// kernel: tpu_custom_call.1
= control target key start
LH: loop header
LB: loop body
LE: loop exit
PB: predicated region body
PF: predicated region fallthrough
CT: control target
= control target key end

     0   :  { %s1242_s0 = inlined_call_operand.vmem [shape: f32[64,12], index: 0, kind: input, shape index: {}]   ;;  %s1243_s1 = inlined_call_operand.vmem [shape: f32[12,48], index: 1, kind: input, shape index: {}]   ;;  %s1244_s2 = inlined_call_operand.vmem [shape: f32[1,48], index: 2, kind: input, shape index: {}]   ;;  %s1245_s3 = inlined_call_operand.hbm [shape: f32[48,256], index: 3, kind: input, shape index: {}]   ;;  %s1246_s4 = inlined_call_operand.vmem [shape: f32[1,256], index: 4, kind: input, shape index: {}]   ;;  %s1247_s5 = inlined_call_operand.hbm [shape: f32[256,256], index: 5, kind: input, shape index: {}]   ;;  %s1248_s6 = inlined_call_operand.vmem [shape: f32[1,256], index: 6, kind: input, shape index: {}]   ;;  %s1249_s7 = inlined_call_operand.vmem [shape: f32[1,256], index: 7, kind: input, shape index: {}]   ;;  %s1250_s8 = inlined_call_operand.<no memory space> [shape: f32[1,1], index: 8, kind: input, shape index: {}]   ;;  %s1251_s9 = inlined_call_operand.vmem [shape: f32[64,1], index: 9, kind: output, shape index: {}]  }
   0x1   :  { %v14_v0 = vstv %s1250_s8 }
   0x2   :  { %15 = vst [vmem:[#allocation2] sm:$0x1] %v14_v0 }
   0x3   :  { %16 = vsyncpa [#allocation4], 0 }
   0x4   :  { %17 = vsyncpa [#allocation6], 0  ;;  %s899_s11 = smov [#allocation3]   ;;  %s851_s15 = scalar_lea.hbm %s1245_s3, 1536 }
   0x5   :  { %s29_s12 = sshll.u32 %s899_s11, 4  ;;  %p852_p0 = scmp.ne.s32.totalorder %s1245_s3, %s851_s15  ;;  %s30_s12 = int_to_ptr.vmem [resolvable:$true] %s29_s12 }
   0x6   :  { %p855_p1 = scmp.lt.u32.totalorder %s851_s15, %s1245_s3 }
   0x8   :  { %p857_p2 = pnand %p855_p1, %p852_p0 }
   0xa   :  { %860 = shalt.err (!%p857_p2)
}
   0xb   :  { %s861_s8 = scalar_lea.vmem %s30_s12, 1536  ;;  %p866_p4 = scmp.lt.s32.totalorder %s30_s12, %s30_s12 }
   0xc   :  { %p862_p3 = scmp.ne.s32.totalorder %s30_s12, %s861_s8  ;;  %p867_p5 = scmp.lt.s32.totalorder %s861_s8, %s861_s8 }
   0xe   :  { %p868_p6 = por %p867_p5, %p866_p4 }
  0x10   :  { %p869_p7 = pnand %p868_p6, %p862_p3 }
  0x12   :  { %872 = shalt.err (!%p869_p7)
}
  0x13   :  { %s900_s20 = smov 256   ;;  %s901_s21 = smov 16  }
  0x14   :  { %35 = dma.hbm_to_vmem [thread:$0]  %s1245_s3, 1536, %s30_s12, [#allocation4], %s900_s20, %s900_s20, %s901_s21  }
  0x15   :  { %s902_s24 = smov [#allocation5]   ;;  %s873_s28 = scalar_lea.hbm %s1247_s5, 8192 }
  0x16   :  { %s43_s25 = sshll.u32 %s902_s24, 4  ;;  %p874_p8 = scmp.ne.s32.totalorder %s1247_s5, %s873_s28  ;;  %s44_s25 = int_to_ptr.vmem [resolvable:$true] %s43_s25 }
  0x17   :  { %p877_p9 = scmp.lt.u32.totalorder %s873_s28, %s1247_s5 }
  0x19   :  { %p879_p10 = pnand %p877_p9, %p874_p8 }
  0x1b   :  { %882 = shalt.err (!%p879_p10)
}
  0x1c   :  { %s883_s13 = scalar_lea.vmem %s44_s25, 8192  ;;  %p888_p12 = scmp.lt.s32.totalorder %s44_s25, %s44_s25 }
  0x1d   :  { %p884_p11 = scmp.ne.s32.totalorder %s44_s25, %s883_s13  ;;  %p889_p13 = scmp.lt.s32.totalorder %s883_s13, %s883_s13 }
  0x1f   :  { %p890_p0 = por %p889_p13, %p888_p12 }
  0x21   :  { %p891_p1 = pnand %p890_p0, %p884_p11 }
  0x23   :  { %894 = shalt.err (!%p891_p1)
}
  0x24   :  { %49 = dma.hbm_to_vmem [thread:$0]  %s1247_s5, 8192, %s44_s25, [#allocation6], %s900_s20, %s900_s20, %s901_s21  }
  0x25   :  { %895 = dma.done.wait [#allocation4], 1536  }
  0x26   :  { %896 = vsyncadd [#allocation4], 4294965760 }
  0x27   :  { %897 = dma.done.wait [#allocation6], 8192  }
  0x28   :  { %898 = vsyncadd [#allocation6], 4294959104  ;;  %vm104_vm0 = vcmask 1043456   ;;  %vm79_vm1 = vcmask 97280   ;;  %vm903_vm2 = vmmov 1   ;;  %v70_v1 = vld [vmem:[%s1243_s1] sm:$0xff] }
  0x29   :  { %vm732_vm3 = vmpackc.low %vm104_vm0, %vm903_vm2  ;;  %v71_v2 = vld [vmem:[%s1243_s1 + $0x8] sm:$0xf]  ;;  %v62_v3 = vld [vmem:[%s1242_s0] sm:$0xff]  ;;  %v904_v30 = vmov 0.0   ;;  %vm245_vm4 = vcmask 392192   ;;  %vm671_vm5 = vcmask 7168  }
  0x2a   :  { %v731_v4 = vpack.c.bf16 %v71_v2, %v70_v1  ;;  %719 = vmatprep.mubr.msk.f32.mxu0 %vm79_vm1, %v62_v3  ;;  %v63_v5 = vld [vmem:[%s1242_s0 + $0x8] sm:$0xff]  ;;  %v64_v6 = vld [vmem:[%s1242_s0 + $0x10] sm:$0xff]  ;;  %v224_v8 = vld [vmem:[#allocation3 + $0x18] sm:$0xff]  ;;  %334 = vmatprep.mubr.f32.mxu1 %v904_v30 }
  0x2b   :  { %v222_v7 = vld [vmem:[#allocation3 + $0x8] sm:$0xff]  ;;  %v221_v10 = vld [vmem:[#allocation3] sm:$0xff]  ;;  %v223_v11 = vld [vmem:[#allocation3 + $0x10] sm:$0xff] }
  0x2c   :  { %733 = vmatprep.subr.msk.bf16.mxu0 %vm732_vm3, %v731_v4  ;;  %v737_v9 = vpack.c.bf16 %v224_v8, %v222_v7  ;;  %v226_v12 = vld [vmem:[#allocation3 + $0x28] sm:$0xff]  ;;  %v739_v13 = vpack.c.bf16 %v223_v11, %v221_v10  ;;  %v228_v14 = vld [vmem:[#allocation3 + $0x38] sm:$0xff]  ;;  %v225_v15 = vld [vmem:[#allocation3 + $0x20] sm:$0xff] }
  0x2d   :  { %736 = vmatpush3.bf16.msk.msra.mxu0 %vm732_vm3, %v731_v4  ;;  %v227_v16 = vld [vmem:[#allocation3 + $0x30] sm:$0xff]  ;;  %v741_v17 = vpack.c.bf16 %v228_v14, %v226_v12  ;;  %v66_v20 = vld [vmem:[%s1242_s0 + $0x20] sm:$0xff]  ;;  %v67_v21 = vld [vmem:[%s1242_s0 + $0x28] sm:$0xff] }
  0x2e   :  { %738 = vmatprep.subr.bf16.mxu1 %v737_v9  ;;  %v743_v18 = vpack.c.bf16 %v227_v16, %v225_v15  ;;  %v65_v19 = vld [vmem:[%s1242_s0 + $0x18] sm:$0xff]  ;;  %v68_v22 = vld [vmem:[%s1242_s0 + $0x30] sm:$0xff]  ;;  %v229_v27 = vld [vmem:[#allocation3 + $0x40] sm:$0xff] }
  0x2f   :  { %740 = vmatpush1.bf16.msra.mxu1 %v739_v13  ;;  %v69_v23 = vld [vmem:[%s1242_s0 + $0x38] sm:$0xff]  ;;  %v230_v24 = vld [vmem:[#allocation3 + $0x48] sm:$0xff]  ;;  %v399_v33 = vld [vmem:[#allocation5] sm:$0xff] }
  0x30   :  { %720 = vmatmul.mubr.msk.f32.vlgmr.msra.gmra.mrb[0].mxu0 %vm79_vm1, %v63_v5  ;;  %742 = vmatprep.subr.bf16.mxu1 %v741_v17  ;;  %v232_v25 = vld [vmem:[#allocation3 + $0x58] sm:$0xff]  ;;  %v231_v28 = vld [vmem:[#allocation3 + $0x50] sm:$0xff]  ;;  %v400_v31 = vld [vmem:[#allocation5 + $0x8] sm:$0xff] }
  0x31   :  { %722 = vmatprep.mubr.msk.f32.mxu0 %vm79_vm1, %v64_v6  ;;  %v745_v26 = vpack.c.bf16 %v232_v25, %v230_v24  ;;  %v747_v29 = vpack.c.bf16 %v231_v28, %v229_v27  ;;  %v402_v32 = vld [vmem:[#allocation5 + $0x18] sm:$0xff]  ;;  %v401_v35 = vld [vmem:[#allocation5 + $0x10] sm:$0xff]  ;;  %v404_v36 = vld [vmem:[#allocation5 + $0x28] sm:$0xff] }
  0x32   :  { %v749_v34 = vpack.c.bf16 %v402_v32, %v400_v31  ;;  %v406_v37 = vld [vmem:[#allocation5 + $0x38] sm:$0xff]  ;;  %v1021_v38 = vpack.c.bf16 %v401_v35, %v399_v33  ;;  %v403_v40 = vld [vmem:[#allocation5 + $0x20] sm:$0xff]  ;;  %v405_v41 = vld [vmem:[#allocation5 + $0x30] sm:$0xff] }
  0x33   :  { %744 = vmatpush1.bf16.msra.mxu1 %v743_v18  ;;  %v1023_v39 = vpack.c.bf16 %v406_v37, %v404_v36  ;;  %v408_v42 = vld [vmem:[#allocation5 + $0x48] sm:$0xff]  ;;  %v410_v43 = vld [vmem:[#allocation5 + $0x58] sm:$0xff]  ;;  %v1026_v44 = vpack.c.bf16 %v405_v41, %v403_v40  ;;  %v407_v46 = vld [vmem:[#allocation5 + $0x40] sm:$0xff] }
  0x34   :  { %723 = vmatmul.mubr.msk.f32.gmra.mrb[2].mxu0 %vm79_vm1, %v65_v19  ;;  %746 = vmatprep.subr.bf16.mxu1 %v745_v26  ;;  %v1029_v45 = vpack.c.bf16 %v410_v43, %v408_v42  ;;  %v409_v47 = vld [vmem:[#allocation5 + $0x50] sm:$0xff]  ;;  %v412_v48 = vld [vmem:[#allocation5 + $0x68] sm:$0xff]  ;;  %v414_v49 = vld [vmem:[#allocation5 + $0x78] sm:$0xff] }
  0x35   :  { %725 = vmatprep.mubr.msk.f32.mxu0 %vm79_vm1, %v66_v20  ;;  %750 = vmatprep.subr.bf16.mxu0 %v749_v34  ;;  %v1032_v50 = vpack.c.bf16 %v409_v47, %v407_v46  ;;  %v1035_v51 = vpack.c.bf16 %v414_v49, %v412_v48  ;;  %v411_v52 = vld [vmem:[#allocation5 + $0x60] sm:$0xff]  ;;  %v413_v53 = vld [vmem:[#allocation5 + $0x70] sm:$0xff]  ;;  %v416_v54 = vld [vmem:[#allocation5 + $0x88] sm:$0xff] }
  0x36   :  { %752 = vmatpush1.bf16.msra.mxu0 %v1021_v38  ;;  %v418_v55 = vld [vmem:[#allocation5 + $0x98] sm:$0xff]  ;;  %v1038_v56 = vpack.c.bf16 %v413_v53, %v411_v52  ;;  %v415_v58 = vld [vmem:[#allocation5 + $0x80] sm:$0xff]  ;;  %v417_v59 = vld [vmem:[#allocation5 + $0x90] sm:$0xff] }
  0x37   :  { %748 = vmatpush1.bf16.msra.mxu1 %v747_v29  ;;  %754 = vmatprep.subr.bf16.mxu0 %v1023_v39  ;;  %v1041_v57 = vpack.c.bf16 %v418_v55, %v416_v54  ;;  %v420_v60 = vld [vmem:[#allocation5 + $0xa8] sm:$0xff]  ;;  %v422_v61 = vld [vmem:[#allocation5 + $0xb8] sm:$0xff]  ;;  %v1044_v62 = vpack.c.bf16 %v417_v59, %v415_v58  ;;  %v419_v0 = vld [vmem:[#allocation5 + $0xa0] sm:$0xff] }
  0x38   :  { %726 = vmatmul.mubr.msk.f32.gmra.mrb[4].mxu0 %vm79_vm1, %v67_v21  ;;  %813 = vmatprep.subr.bf16.mxu1 %v749_v34  ;;  %v1047_v63 = vpack.c.bf16 %v422_v61, %v420_v60  ;;  %v421_v1 = vld [vmem:[#allocation5 + $0xb0] sm:$0xff]  ;;  %v424_v2 = vld [vmem:[#allocation5 + $0xc8] sm:$0xff]  ;;  %v426_v3 = vld [vmem:[#allocation5 + $0xd8] sm:$0xff] }
  0x39   :  { %728 = vmatprep.mubr.msk.f32.mxu0 %vm79_vm1, %v68_v22  ;;  %v1050_v4 = vpack.c.bf16 %v421_v1, %v419_v0  ;;  %v1053_v5 = vpack.c.bf16 %v426_v3, %v424_v2  ;;  %v423_v6 = vld [vmem:[#allocation5 + $0xc0] sm:$0xff]  ;;  %v425_v7 = vld [vmem:[#allocation5 + $0xd0] sm:$0xff]  ;;  %v428_v8 = vld [vmem:[#allocation5 + $0xe8] sm:$0xff] }
  0x3a   :  { %756 = vmatpush1.bf16.msra.mxu0 %v1026_v44  ;;  %v430_v9 = vld [vmem:[#allocation5 + $0xf8] sm:$0xff]  ;;  %v1056_v10 = vpack.c.bf16 %v425_v7, %v423_v6  ;;  %v427_v12 = vld [vmem:[#allocation5 + $0xe0] sm:$0xff]  ;;  %v429_v13 = vld [vmem:[#allocation5 + $0xf0] sm:$0xff] }
  0x3b   :  { %758 = vmatprep.subr.bf16.mxu0 %v1029_v45  ;;  %v1059_v11 = vpack.c.bf16 %v430_v9, %v428_v8  ;;  %v432_v14 = vld [vmem:[#allocation5 + $0x108] sm:$0xff]  ;;  %v434_v15 = vld [vmem:[#allocation5 + $0x118] sm:$0xff]  ;;  %v1062_v16 = vpack.c.bf16 %v429_v13, %v427_v12  ;;  %v431_v18 = vld [vmem:[#allocation5 + $0x100] sm:$0xff] }
  0x3c   :  { %729 = vmatmul.mubr.msk.f32.gmra.mrb[6].mxu0 %vm79_vm1, %v69_v23  ;;  %v1065_v17 = vpack.c.bf16 %v434_v15, %v432_v14  ;;  %v433_v19 = vld [vmem:[#allocation5 + $0x110] sm:$0xff]  ;;  %v436_v20 = vld [vmem:[#allocation5 + $0x128] sm:$0xff]  ;;  %v438_v21 = vld [vmem:[#allocation5 + $0x138] sm:$0xff] }
  0x3d   :  { %v1068_v22 = vpack.c.bf16 %v433_v19, %v431_v18  ;;  %v1071_v23 = vpack.c.bf16 %v438_v21, %v436_v20  ;;  %v435_v24 = vld [vmem:[#allocation5 + $0x120] sm:$0xff]  ;;  %v437_v25 = vld [vmem:[#allocation5 + $0x130] sm:$0xff]  ;;  %v440_v26 = vld [vmem:[#allocation5 + $0x148] sm:$0xff] }
  0x3e   :  { %760 = vmatpush1.bf16.msra.mxu0 %v1032_v50  ;;  %v442_v27 = vld [vmem:[#allocation5 + $0x158] sm:$0xff]  ;;  %v1074_v28 = vpack.c.bf16 %v437_v25, %v435_v24  ;;  %v439_v31 = vld [vmem:[#allocation5 + $0x140] sm:$0xff]  ;;  %v441_v32 = vld [vmem:[#allocation5 + $0x150] sm:$0xff] }
  0x3f   :  { %762 = vmatprep.subr.bf16.mxu0 %v1035_v51  ;;  %v1077_v29 = vpack.c.bf16 %v442_v27, %v440_v26  ;;  %v444_v33 = vld [vmem:[#allocation5 + $0x168] sm:$0xff]  ;;  %v446_v34 = vld [vmem:[#allocation5 + $0x178] sm:$0xff]  ;;  %v1080_v35 = vpack.c.bf16 %v441_v32, %v439_v31  ;;  %v443_v37 = vld [vmem:[#allocation5 + $0x160] sm:$0xff] }
  0x40   :  { %v1083_v36 = vpack.c.bf16 %v446_v34, %v444_v33  ;;  %v445_v40 = vld [vmem:[#allocation5 + $0x170] sm:$0xff]  ;;  %v448_v41 = vld [vmem:[#allocation5 + $0x188] sm:$0xff]  ;;  %v450_v42 = vld [vmem:[#allocation5 + $0x198] sm:$0xff] }
  0x41   :  { %v1086_v43 = vpack.c.bf16 %v445_v40, %v443_v37  ;;  %v1089_v46 = vpack.c.bf16 %v450_v42, %v448_v41  ;;  %v447_v47 = vld [vmem:[#allocation5 + $0x180] sm:$0xff]  ;;  %v449_v48 = vld [vmem:[#allocation5 + $0x190] sm:$0xff]  ;;  %v452_v49 = vld [vmem:[#allocation5 + $0x1a8] sm:$0xff] }
  0x42   :  { %764 = vmatpush1.bf16.msra.mxu0 %v1038_v56  ;;  %v454_v52 = vld [vmem:[#allocation5 + $0x1b8] sm:$0xff]  ;;  %v1092_v53 = vpack.c.bf16 %v449_v48, %v447_v47  ;;  %v451_v55 = vld [vmem:[#allocation5 + $0x1a0] sm:$0xff]  ;;  %v453_v58 = vld [vmem:[#allocation5 + $0x1b0] sm:$0xff] }
  0x43   :  { %766 = vmatprep.subr.bf16.mxu0 %v1041_v57  ;;  %v1095_v54 = vpack.c.bf16 %v454_v52, %v452_v49  ;;  %v456_v59 = vld [vmem:[#allocation5 + $0x1c8] sm:$0xff]  ;;  %v458_v60 = vld [vmem:[#allocation5 + $0x1d8] sm:$0xff]  ;;  %v1098_v61 = vpack.c.bf16 %v453_v58, %v451_v55 }
  0x44   :  { %v1101_v0 = vpack.c.bf16 %v458_v60, %v456_v59  ;;  %v686_v1 = vld [vmem:[%s1244_s2] ss:$0 sm:$0xff] }
  0x45   :  { %v233_v27 = vld [vmem:[%s1246_s4] sm:$0x3] }
  0x46   :  { %768 = vmatpush1.bf16.msra.mxu0 %v1044_v62 }
  0x47   :  { %770 = vmatprep.subr.bf16.mxu0 %v1047_v63 }
  0x4a   :  { %772 = vmatpush1.bf16.msra.mxu0 %v1050_v4 }
  0x4b   :  { %774 = vmatprep.subr.bf16.mxu0 %v1053_v5 }
  0x4e   :  { %776 = vmatpush1.bf16.msra.mxu0 %v1056_v10 }
  0x4f   :  { %778 = vmatprep.subr.bf16.mxu0 %v1059_v11 }
  0x52   :  { %780 = vmatpush1.bf16.msra.mxu0 %v1062_v16 }
  0x53   :  { %782 = vmatprep.subr.bf16.mxu0 %v1065_v17 }
  0x56   :  { %784 = vmatpush1.bf16.msra.mxu0 %v1068_v22 }
  0x57   :  { %786 = vmatprep.subr.bf16.mxu0 %v1071_v23 }
  0x5a   :  { %788 = vmatpush1.bf16.msra.mxu0 %v1074_v28 }
  0x5b   :  { %790 = vmatprep.subr.bf16.mxu0 %v1077_v29 }
  0x5e   :  { %792 = vmatpush1.bf16.msra.mxu0 %v1080_v35 }
  0x5f   :  { %794 = vmatprep.subr.bf16.mxu0 %v1083_v36 }
  0x62   :  { %796 = vmatpush1.bf16.msra.mxu0 %v1086_v43 }
  0x63   :  { %798 = vmatprep.subr.bf16.mxu0 %v1089_v46 }
  0x66   :  { %800 = vmatpush1.bf16.msra.mxu0 %v1092_v53 }
  0x67   :  { %802 = vmatprep.subr.bf16.mxu0 %v1095_v54 }
  0x6a   :  { %804 = vmatpush1.bf16.msra.mxu0 %v1098_v61 }
  0x6b   :  { %806 = vmatprep.subr.bf16.mxu0 %v1101_v0 }
 0x103   :  { %v721_v2 = vpop.f32.mrb[0].mxu0 }
 0x104   :  { %v174_v3 = vpop.f32.mrb[1].mxu0  ;;  %v180_v7 = vadd.f32 %v721_v2, %v686_v1 }
 0x105   :  { %v175_v6 = vadd.f32 %v686_v1, %v174_v3 }
 0x106   :  { %v214_v14 = vmax.f32 %v180_v7, 0.0 }
 0x107   :  { %v213_v8 = vmax.f32 %v175_v6, 0.0  ;;  %v724_v9 = vpop.f32.mrb[2].mxu0 }
 0x108   :  { %v184_v12 = vpop.f32.mrb[3].mxu0  ;;  %v190_v20 = vadd.f32 %v724_v9, %v686_v1 }
 0x109   :  { %696 = vmatmul.mubr.msk.f32.vlgmr.msra.gmra.mrb[0].mxu1 %vm245_vm4, %v213_v8  ;;  %v185_v13 = vadd.f32 %v686_v1, %v184_v12 }
 0x10a   :  { %340 = vmatprep.mubr.f32.mxu1 %v904_v30  ;;  %829 = vmatpush1.bf16.msra.mxu1 %v1021_v38 }
 0x10b   :  { %v727_v15 = vpop.f32.mrb[4].mxu0  ;;  %814 = vmatprep.subr.bf16.mxu1 %v1023_v39  ;;  %v215_v19 = vmax.f32 %v185_v13, 0.0  ;;  %v216_v39 = vmax.f32 %v190_v20, 0.0 }
 0x10c   :  { %v194_v18 = vpop.f32.mrb[5].mxu0 }
 0x10d   :  { %697 = vmatmul.mubr.msk.f32.gmra.mrb[2].mxu1 %vm245_vm4, %v214_v14  ;;  %v195_v38 = vadd.f32 %v686_v1, %v194_v18 }
 0x10e   :  { %346 = vmatprep.mubr.f32.mxu1 %v904_v30  ;;  %830 = vmatpush1.bf16.msra.mxu1 %v1026_v44  ;;  %v200_v44 = vadd.f32 %v727_v15, %v686_v1 }
 0x10f   :  { %v730_v21 = vpop.f32.mrb[6].mxu0  ;;  %815 = vmatprep.subr.bf16.mxu1 %v1029_v45  ;;  %v217_v25 = vmax.f32 %v195_v38, 0.0 }
 0x110   :  { %v204_v24 = vpop.f32.mrb[7].mxu0 }
 0x111   :  { %698 = vmatmul.mubr.msk.f32.gmra.mrb[4].mxu1 %vm245_vm4, %v215_v19  ;;  %v205_v45 = vadd.f32 %v686_v1, %v204_v24 }
 0x112   :  { %352 = vmatprep.mubr.f32.mxu1 %v904_v30  ;;  %831 = vmatpush1.bf16.msra.mxu1 %v1032_v50  ;;  %v218_v50 = vmax.f32 %v200_v44, 0.0 }
 0x113   :  { %816 = vmatprep.subr.bf16.mxu1 %v1035_v51  ;;  %v219_v51 = vmax.f32 %v205_v45, 0.0 }
 0x115   :  { %699 = vmatmul.mubr.msk.f32.gmra.mrb[6].mxu1 %vm245_vm4, %v216_v39 }
 0x116   :  { %358 = vmatprep.mubr.f32.mxu1 %v904_v30  ;;  %832 = vmatpush1.bf16.msra.mxu1 %v1038_v56  ;;  %v210_v56 = vadd.f32 %v730_v21, %v686_v1 }
 0x117   :  { %817 = vmatprep.subr.bf16.mxu1 %v1041_v57 }
 0x118   :  { %v220_v57 = vmax.f32 %v210_v56, 0.0 }
 0x119   :  { %700 = vmatmul.mubr.msk.f32.gmra.mrb[8].mxu1 %vm245_vm4, %v217_v25 }
 0x11a   :  { %364 = vmatprep.mubr.f32.mxu1 %v904_v30  ;;  %833 = vmatpush1.bf16.msra.mxu1 %v1044_v62  ;;  %v457_v62 = vld [vmem:[#allocation5 + $0x1d0] sm:$0xff] }
 0x11b   :  { %818 = vmatprep.subr.bf16.mxu1 %v1047_v63 }
 0x11d   :  { %701 = vmatmul.mubr.msk.f32.gmra.mrb[10].mxu1 %vm245_vm4, %v218_v50 }
 0x11e   :  { %370 = vmatprep.mubr.f32.mxu1 %v904_v30  ;;  %834 = vmatpush1.bf16.msra.mxu1 %v1050_v4  ;;  %v460_v4 = vld [vmem:[#allocation5 + $0x1e8] sm:$0xff] }
 0x11f   :  { %819 = vmatprep.subr.bf16.mxu1 %v1053_v5  ;;  %v462_v5 = vld [vmem:[#allocation5 + $0x1f8] sm:$0xff] }
 0x121   :  { %702 = vmatmul.mubr.msk.f32.gmra.mrb[12].mxu1 %vm245_vm4, %v219_v51 }
 0x122   :  { %376 = vmatprep.mubr.f32.mxu1 %v904_v30  ;;  %835 = vmatpush1.bf16.msra.mxu1 %v1056_v10  ;;  %v455_v30 = vld [vmem:[#allocation5 + $0x1c0] sm:$0xff]  ;;  %v809_v10 = vpack.c.bf16 %v462_v5, %v460_v4 }
 0x123   :  { %820 = vmatprep.subr.bf16.mxu1 %v1059_v11  ;;  %v807_v63 = vpack.c.bf16 %v457_v62, %v455_v30  ;;  %v459_v11 = vld [vmem:[#allocation5 + $0x1e0] sm:$0xff] }
 0x124   :  { %v463_v30 = vld [vmem:[%s1248_s6] sm:$0x3] }
 0x125   :  { %703 = vmatmul.mubr.msk.f32.gmra.mrb[14].mxu1 %vm245_vm4, %v220_v57  ;;  %808 = vmatpush1.bf16.msra.mxu0 %v807_v63  ;;  %v604_v4 = vld [vmem:[%s1249_s7] sm:$0x3] }
 0x126   :  { %836 = vmatpush1.bf16.msra.mxu1 %v1062_v16  ;;  %v461_v16 = vld [vmem:[#allocation5 + $0x1f0] sm:$0xff]  ;;  %810 = vmatprep.subr.bf16.mxu0 %v809_v10 }
 0x127   :  { %821 = vmatprep.subr.bf16.mxu1 %v1065_v17  ;;  %v811_v17 = vpack.c.bf16 %v461_v16, %v459_v11 }
 0x129   :  { %812 = vmatpush1.bf16.msra.mxu0 %v811_v17 }
 0x12a   :  { %837 = vmatpush1.bf16.msra.mxu1 %v1068_v22  ;;  %v235_v22 = vlaneseq }
 0x12b   :  { %822 = vmatprep.subr.bf16.mxu1 %v1071_v23 }
 0x12c   :  { %v236_v23 = vshrl.u32 %v235_v22, 7 }
 0x12e   :  { %838 = vmatpush1.bf16.msra.mxu1 %v1074_v28  ;;  %v1151_v26 = vsub.s32 0, %v236_v23  ;;  %v1156_v28 = vsub.s32 1, %v236_v23 }
 0x12f   :  { %823 = vmatprep.subr.bf16.mxu1 %v1077_v29 }
 0x130   :  { %v238_v29 = vrot.slane %v233_v27, %v1151_v26  ;;  %v242_v31 = vrot.slane %v233_v27, %v1156_v28  ;;  %v1164_v62 = vrot.slane %v463_v30, %v1151_v26  ;;  %v1174_v16 = vrot.slane %v604_v4, %v1151_v26 }
 0x131   :  { %v1178_v22 = vrot.slane %v604_v4, %v1156_v28 }
 0x132   :  { %839 = vmatpush1.bf16.msra.mxu1 %v1080_v35 }
 0x133   :  { %824 = vmatprep.subr.bf16.mxu1 %v1083_v36 }
 0x136   :  { %840 = vmatpush1.bf16.msra.mxu1 %v1086_v43 }
 0x137   :  { %825 = vmatprep.subr.bf16.mxu1 %v1089_v46 }
 0x13a   :  { %841 = vmatpush1.bf16.msra.mxu1 %v1092_v53 }
 0x13b   :  { %826 = vmatprep.subr.bf16.mxu1 %v1095_v54 }
 0x13e   :  { %842 = vmatpush1.bf16.msra.mxu1 %v1098_v61 }
 0x13f   :  { %827 = vmatprep.subr.bf16.mxu1 %v1101_v0 }
 0x142   :  { %843 = vmatpush1.bf16.msra.mxu1 %v807_v63  ;;  %v1167_v63 = vrot.slane %v463_v30, %v1156_v28 }
 0x143   :  { %828 = vmatprep.subr.bf16.mxu1 %v809_v10 }
 0x146   :  { %844 = vmatpush1.bf16.msra.mxu1 %v811_v17 }
 0x1dc   :  { %v336_v32 = vpop.f32.mrb[0].mxu1 }
 0x1dd   :  { %v337_v33 = vadd.f32 %v336_v32, %v238_v29  ;;  %v338_v34 = vpop.f32.mrb[1].mxu1 }
 0x1de   :  { %v339_v35 = vadd.f32 %v338_v34, %v242_v31 }
 0x1df   :  { %v383_v40 = vmax.f32 %v337_v33, 0.0 }
 0x1e0   :  { %v384_v36 = vmax.f32 %v339_v35, 0.0  ;;  %v342_v37 = vpop.f32.mrb[2].mxu1 }
 0x1e1   :  { %v343_v41 = vadd.f32 %v342_v37, %v238_v29  ;;  %v344_v42 = vpop.f32.mrb[3].mxu1 }
 0x1e2   :  { %v345_v43 = vadd.f32 %v344_v42, %v242_v31  ;;  %539 = vmatprep.mubr.f32.mxu0 %v384_v36 }
 0x1e3   :  { %540 = vmatmul.mubr.f32.vlgmr.msra.gmra.mrb[8].mxu0 %v383_v40  ;;  %v385_v48 = vmax.f32 %v343_v41, 0.0 }
 0x1e4   :  { %v386_v46 = vmax.f32 %v345_v43, 0.0  ;;  %v348_v47 = vpop.f32.mrb[4].mxu1 }
 0x1e5   :  { %v349_v49 = vadd.f32 %v348_v47, %v238_v29  ;;  %v350_v52 = vpop.f32.mrb[5].mxu1 }
 0x1e6   :  { %v351_v53 = vadd.f32 %v350_v52, %v242_v31  ;;  %545 = vmatprep.mubr.f32.mxu0 %v386_v46 }
 0x1e7   :  { %546 = vmatmul.mubr.f32.gmra.mrb[10].mxu0 %v385_v48  ;;  %v387_v58 = vmax.f32 %v349_v49, 0.0 }
 0x1e8   :  { %v388_v54 = vmax.f32 %v351_v53, 0.0  ;;  %v354_v55 = vpop.f32.mrb[6].mxu1 }
 0x1e9   :  { %v355_v59 = vadd.f32 %v354_v55, %v238_v29  ;;  %v356_v60 = vpop.f32.mrb[7].mxu1 }
 0x1ea   :  { %v357_v61 = vadd.f32 %v356_v60, %v242_v31  ;;  %551 = vmatprep.mubr.f32.mxu0 %v388_v54 }
 0x1eb   :  { %552 = vmatmul.mubr.f32.gmra.mrb[12].mxu0 %v387_v58  ;;  %v389_v2 = vmax.f32 %v355_v59, 0.0 }
 0x1ec   :  { %v390_v0 = vmax.f32 %v357_v61, 0.0  ;;  %v360_v1 = vpop.f32.mrb[8].mxu1 }
 0x1ed   :  { %v361_v3 = vadd.f32 %v360_v1, %v238_v29  ;;  %v362_v6 = vpop.f32.mrb[9].mxu1 }
 0x1ee   :  { %v363_v7 = vadd.f32 %v362_v6, %v242_v31  ;;  %557 = vmatprep.mubr.f32.mxu0 %v390_v0 }
 0x1ef   :  { %558 = vmatmul.mubr.f32.gmra.mrb[14].mxu0 %v389_v2  ;;  %v391_v12 = vmax.f32 %v361_v3, 0.0 }
 0x1f0   :  { %v392_v8 = vmax.f32 %v363_v7, 0.0  ;;  %v366_v9 = vpop.f32.mrb[10].mxu1 }
 0x1f1   :  { %v367_v13 = vadd.f32 %v366_v9, %v238_v29  ;;  %v368_v14 = vpop.f32.mrb[11].mxu1 }
 0x1f2   :  { %v369_v15 = vadd.f32 %v368_v14, %v242_v31  ;;  %563 = vmatprep.mubr.f32.mxu0 %v392_v8 }
 0x1f3   :  { %564 = vmatmul.mubr.f32.gmra.mrb[16].mxu0 %v391_v12  ;;  %v393_v20 = vmax.f32 %v367_v13, 0.0 }
 0x1f4   :  { %v394_v18 = vmax.f32 %v369_v15, 0.0  ;;  %v372_v19 = vpop.f32.mrb[12].mxu1 }
 0x1f5   :  { %v373_v21 = vadd.f32 %v372_v19, %v238_v29  ;;  %v374_v24 = vpop.f32.mrb[13].mxu1 }
 0x1f6   :  { %v375_v38 = vadd.f32 %v374_v24, %v242_v31  ;;  %569 = vmatprep.mubr.f32.mxu1 %v394_v18 }
 0x1f7   :  { %570 = vmatmul.mubr.f32.vlgmr.msra.gmra.mrb[16].mxu1 %v393_v20  ;;  %v395_v44 = vmax.f32 %v373_v21, 0.0 }
 0x1f8   :  { %v396_v39 = vmax.f32 %v375_v38, 0.0  ;;  %v378_v25 = vpop.f32.mrb[14].mxu1 }
 0x1f9   :  { %v379_v45 = vadd.f32 %v378_v25, %v238_v29  ;;  %v380_v50 = vpop.f32.mrb[15].mxu1 }
 0x1fa   :  { %v381_v51 = vadd.f32 %v380_v50, %v242_v31  ;;  %575 = vmatprep.mubr.f32.mxu1 %v396_v39 }
 0x1fb   :  { %576 = vmatmul.mubr.f32.gmra.mrb[18].mxu1 %v395_v44  ;;  %v397_v57 = vmax.f32 %v379_v45, 0.0 }
 0x1fc   :  { %v398_v56 = vmax.f32 %v381_v51, 0.0 }
 0x1fe   :  { %581 = vmatprep.mubr.f32.mxu1 %v398_v56 }
 0x1ff   :  { %582 = vmatmul.mubr.f32.gmra.mrb[20].mxu1 %v397_v57 }
 0x2b6   :  { %v541_v5 = vpop.f32.mrb[8].mxu0 }
 0x2b7   :  { %v542_v10 = vadd.f32 %v541_v5, %v1164_v62  ;;  %v543_v11 = vpop.f32.mrb[9].mxu0 }
 0x2b8   :  { %v544_v17 = vadd.f32 %v543_v11, %v1167_v63 }
 0x2b9   :  { %v588_v23 = vmax.f32 %v542_v10, 0.0 }
 0x2ba   :  { %v589_v27 = vmax.f32 %v544_v17, 0.0  ;;  %v547_v29 = vpop.f32.mrb[10].mxu0 }
 0x2bb   :  { %v548_v31 = vadd.f32 %v547_v29, %v1164_v62  ;;  %v549_v32 = vpop.f32.mrb[11].mxu0  ;;  %v616_v33 = vmul.f32 %v1174_v16, %v588_v23 }
 0x2bc   :  { %v550_v34 = vadd.f32 %v549_v32, %v1167_v63  ;;  %v617_v35 = vmul.f32 %v1178_v22, %v589_v27 }
 0x2bd   :  { %v590_v36 = vmax.f32 %v548_v31, 0.0 }
 0x2be   :  { %v591_v26 = vmax.f32 %v550_v34, 0.0  ;;  %v553_v37 = vpop.f32.mrb[12].mxu0  ;;  %v632_v40 = vadd.f32 %v617_v35, %v616_v33 }
 0x2bf   :  { %v618_v41 = vmul.f32 %v1174_v16, %v590_v36  ;;  %v554_v28 = vadd.f32 %v553_v37, %v1164_v62  ;;  %v555_v42 = vpop.f32.mrb[13].mxu0  ;;  %v704_v36 = vld [vmem:[#allocation2] ss:$0 sm:$0xff] }
 0x2c0   :  { %v619_v43 = vmul.f32 %v1178_v22, %v591_v26  ;;  %v556_v46 = vadd.f32 %v555_v42, %v1167_v63  ;;  %633 = vadd.xlane.f32.xlu0 %v632_v40 }
 0x2c1   :  { %v592_v47 = vmax.f32 %v554_v28, 0.0 }
 0x2c2   :  { %v593_v48 = vmax.f32 %v556_v46, 0.0  ;;  %v559_v49 = vpop.f32.mrb[14].mxu0  ;;  %v635_v52 = vadd.f32 %v619_v43, %v618_v41 }
 0x2c3   :  { %v560_v53 = vadd.f32 %v559_v49, %v1164_v62  ;;  %v561_v54 = vpop.f32.mrb[15].mxu0  ;;  %v620_v55 = vmul.f32 %v1174_v16, %v592_v47 }
 0x2c4   :  { %v562_v58 = vadd.f32 %v561_v54, %v1167_v63  ;;  %636 = vadd.xlane.f32.xlu0 %v635_v52  ;;  %v621_v59 = vmul.f32 %v1178_v22, %v593_v48 }
 0x2c5   :  { %v594_v60 = vmax.f32 %v560_v53, 0.0 }
 0x2c6   :  { %v595_v61 = vmax.f32 %v562_v58, 0.0  ;;  %v565_v0 = vpop.f32.mrb[16].mxu0  ;;  %v638_v1 = vadd.f32 %v621_v59, %v620_v55 }
 0x2c7   :  { %v622_v2 = vmul.f32 %v1174_v16, %v594_v60  ;;  %v566_v3 = vadd.f32 %v565_v0, %v1164_v62  ;;  %v567_v6 = vpop.f32.mrb[17].mxu0 }
 0x2c8   :  { %v623_v7 = vmul.f32 %v1178_v22, %v595_v61  ;;  %v568_v8 = vadd.f32 %v567_v6, %v1167_v63  ;;  %639 = vadd.xlane.f32.xlu1 %v638_v1 }
 0x2c9   :  { %v596_v9 = vmax.f32 %v566_v3, 0.0 }
 0x2ca   :  { %v597_v12 = vmax.f32 %v568_v8, 0.0  ;;  %v571_v13 = vpop.f32.mrb[16].mxu1  ;;  %v641_v14 = vadd.f32 %v623_v7, %v622_v2 }
 0x2cb   :  { %v624_v15 = vmul.f32 %v1174_v16, %v596_v9  ;;  %v572_v18 = vadd.f32 %v571_v13, %v1164_v62  ;;  %v573_v19 = vpop.f32.mrb[17].mxu1 }
 0x2cc   :  { %v625_v20 = vmul.f32 %v1178_v22, %v597_v12  ;;  %v574_v21 = vadd.f32 %v573_v19, %v1167_v63  ;;  %642 = vadd.xlane.f32.xlu1 %v641_v14 }
 0x2cd   :  { %v598_v24 = vmax.f32 %v572_v18, 0.0 }
 0x2ce   :  { %v599_v38 = vmax.f32 %v574_v21, 0.0  ;;  %v577_v39 = vpop.f32.mrb[18].mxu1  ;;  %v644_v25 = vadd.f32 %v625_v20, %v624_v15 }
 0x2cf   :  { %v626_v44 = vmul.f32 %v1174_v16, %v598_v24  ;;  %v578_v45 = vadd.f32 %v577_v39, %v1164_v62  ;;  %v579_v50 = vpop.f32.mrb[19].mxu1 }
 0x2d0   :  { %v627_v51 = vmul.f32 %v1178_v22, %v599_v38  ;;  %v580_v56 = vadd.f32 %v579_v50, %v1167_v63  ;;  %645 = vadd.xlane.f32.xlu0 %v644_v25 }
 0x2d1   :  { %v600_v57 = vmax.f32 %v578_v45, 0.0 }
 0x2d2   :  { %v601_v30 = vmax.f32 %v580_v56, 0.0  ;;  %v583_v4 = vpop.f32.mrb[20].mxu1  ;;  %v647_v5 = vadd.f32 %v627_v51, %v626_v44 }
 0x2d3   :  { %v628_v10 = vmul.f32 %v1174_v16, %v600_v57  ;;  %v584_v11 = vadd.f32 %v583_v4, %v1164_v62  ;;  %v585_v17 = vpop.f32.mrb[21].mxu1 }
 0x2d4   :  { %v629_v23 = vmul.f32 %v1178_v22, %v601_v30  ;;  %v586_v27 = vadd.f32 %v585_v17, %v1167_v63  ;;  %648 = vadd.xlane.f32.xlu1 %v647_v5 }
 0x2d5   :  { %v602_v29 = vmax.f32 %v584_v11, 0.0 }
 0x2d6   :  { %v603_v31 = vmax.f32 %v586_v27, 0.0  ;;  %v650_v32 = vadd.f32 %v629_v23, %v628_v10 }
 0x2d7   :  { %v630_v33 = vmul.f32 %v1174_v16, %v602_v29 }
 0x2d8   :  { %v631_v34 = vmul.f32 %v1178_v22, %v603_v31  ;;  %651 = vadd.xlane.f32.xlu0 %v650_v32 }
 0x2da   :  { %v653_v35 = vadd.f32 %v631_v34, %v630_v33 }
 0x2dc   :  { %654 = vadd.xlane.f32.xlu1 %v653_v35 }
 0x34d   :  { %v634_v26 = vpop.xlane.xlu0 %633 }
 0x34e   :  { %v663_v62 = vadd.f32 %v704_v36, %v634_v26 }
 0x350   :  { %672 = vst.msk [vmem:[%s1251_s9] sm:$0xff] %vm671_vm5, %v663_v62 }
 0x351   :  { %v637_v63 = vpop.xlane.xlu0 %636 }
 0x352   :  { %v664_v37 = vadd.f32 %v704_v36, %v637_v63 }
 0x354   :  { %673 = vst.msk [vmem:[%s1251_s9 + $0x8] sm:$0xff] %vm671_vm5, %v664_v37 }
 0x355   :  { %v640_v16 = vpop.xlane.xlu1 %639 }
 0x356   :  { %v665_v22 = vadd.f32 %v704_v36, %v640_v16 }
 0x358   :  { %674 = vst.msk [vmem:[%s1251_s9 + $0x10] sm:$0xff] %vm671_vm5, %v665_v22 }
 0x359   :  { %v643_v40 = vpop.xlane.xlu1 %642 }
 0x35a   :  { %v666_v41 = vadd.f32 %v704_v36, %v643_v40 }
 0x35c   :  { %675 = vst.msk [vmem:[%s1251_s9 + $0x18] sm:$0xff] %vm671_vm5, %v666_v41 }
 0x35d   :  { %v646_v28 = vpop.xlane.xlu0 %645 }
 0x35e   :  { %v667_v42 = vadd.f32 %v704_v36, %v646_v28 }
 0x360   :  { %676 = vst.msk [vmem:[%s1251_s9 + $0x20] sm:$0xff] %vm671_vm5, %v667_v42 }
 0x361   :  { %v649_v43 = vpop.xlane.xlu1 %648 }
 0x362   :  { %v668_v46 = vadd.f32 %v704_v36, %v649_v43 }
 0x364   :  { %677 = vst.msk [vmem:[%s1251_s9 + $0x28] sm:$0xff] %vm671_vm5, %v668_v46 }
 0x365   :  { %v652_v47 = vpop.xlane.xlu0 %651 }
 0x366   :  { %v669_v48 = vadd.f32 %v704_v36, %v652_v47 }
 0x368   :  { %678 = vst.msk [vmem:[%s1251_s9 + $0x30] sm:$0xff] %vm671_vm5, %v669_v48 }
 0x369   :  { %v655_v49 = vpop.xlane.xlu1 %654 }
 0x36a   :  { %v670_v52 = vadd.f32 %v704_v36, %v655_v49 }
 0x36c   :  { %679 = vst.msk [vmem:[%s1251_s9 + $0x38] sm:$0xff] %vm671_vm5, %v670_v52 }
 0x36d   :  { %684 = vsyncpa [#allocation4], 1 }
 0x36e   :  { %685 = vsyncpa [#allocation6], 1 }

</bundles_post_ra>
